<compile_context>
chip_gen: v5e
topology: v5e:2x2
jax: 0.10.0
libtpu: 0.0.40
codegen_flags: <defaults>
</compile_context>

<pallas_src>
import jax
import jax.numpy as jnp
from jax.experimental import pallas as pl
from jax.experimental.pallas import tpu as pltpu


def _round_up(x, m):
    return ((x + m - 1) // m) * m


def _vmem_tile_bytes(rows, cols, itemsize):
    # Physical VMEM footprint of a 2-D tile: sublanes pad to 8, lanes to 128.
    return _round_up(max(rows, 1), 8) * _round_up(max(cols, 1), 128) * itemsize


def _time_embedding_kernel(idx_ref, table_ref, out_ref):
    """One grid step: gather rows*pack embeddings via a one-hot MXU matmul.

    idx_ref:   (rows, pack)     int32  -- `pack` token ids per packed row
    table_ref: (pack*V, pack*D) float  -- block-diagonal packed table (resident)
    out_ref:   (rows, pack*D)   float  -- lane-dense output (pack*D == 128 when
                                          pack > 1), stored with no relayout
    """
    rows, pack = idx_ref.shape
    pv = table_ref.shape[0]
    v = pv // pack

    idx = idx_ref[...]
    col = jax.lax.broadcasted_iota(jnp.int32, (rows, pv), 1)

    # one_hot[r, c] = 1 iff c == idx[r, g] + g*V for group g = c // V and the id
    # is in range.  Group targets live in disjoint column ranges, so a sum of
    # the per-group matches stays exactly 0/1.  Out-of-range / negative ids
    # match nothing -> all-zero row (same as the wrapper's XLA fallback).
    one_hot = jnp.zeros((rows, pv), dtype=table_ref.dtype)
    for g in range(pack):                        # pack is static & small; unrolled
        raw = idx[:, g:g + 1]                    # (rows, 1)
        valid = (raw >= 0) & (raw < v)
        target = jnp.where(valid, raw + g * v, -1)
        one_hot = one_hot + (col == target).astype(table_ref.dtype)

    out_ref[...] = jnp.dot(
        one_hot, table_ref[...], preferred_element_type=jnp.float32
    ).astype(out_ref.dtype)


def time_embeddings(time_features, table, *, block_t=4096, min_pallas_tokens=2048,
                    max_table_vmem_bytes=8 << 20, force_pallas=False):
    """Pallas equivalent of nn.Embedding(time_slot + 1, D, padding_idx=0)(time_features).

    `table` may be float32 or bfloat16; the one-hot is exact 0/1 in either
    dtype and accumulation is in f32, so the gather stays bit-exact.
    """
    orig_shape = time_features.shape
    v, d = table.shape
    itemsize = table.dtype.itemsize

    # Lane-dense packing factor: `pack` tokens share one 128-lane output row.
    pack = (128 // d) if (d < 128 and 128 % d == 0) else 1
    # TODO(synk): if 128 % D != 0 (e.g. D=48) pack==1 and the sub-128-lane
    # output falls back to masked partial stores; pad D upstream to avoid it.
    pv, pd = pack * v, pack * d
    packed_table_bytes = pv * pd * itemsize

    flat = time_features.reshape(-1).astype(jnp.int32)
    t = flat.shape[0]

    def _xla_gather():
        # Masked so out-of-range / negative ids give zero rows, matching the
        # Pallas path exactly.
        idx = time_features.astype(jnp.int32)
        valid = (idx >= 0) & (idx < v)
        return jnp.where(valid[..., None],
                         table[jnp.clip(idx, 0, v - 1)],
                         jnp.zeros((), table.dtype))

    if not force_pallas and (t < min_pallas_tokens
                             or packed_table_bytes > max_table_vmem_bytes):
        return _xla_gather()

    # Block-diagonal packed table: copy g occupies rows [g*V,(g+1)*V) and lanes
    # [g*D,(g+1)*D).
    if pack > 1:
        packed = jnp.zeros((pv, pd), table.dtype)
        for g in range(pack):
            packed = packed.at[g * v:(g + 1) * v, g * d:(g + 1) * d].set(table)
    else:
        packed = table

    row_align = 8 * pack            # keeps index & output tiles (8,128)-legal
    # Big blocks amortize per-step overhead; halve so large inputs always get
    # >= 2 parallel grid steps (v7x megacore sharding of the token axis).
    blk = min(block_t, _round_up(max((t + 1) // 2, 1), row_align))
    blk = max(blk, row_align)
    t_pad = _round_up(t, blk)
    n_blocks = t_pad // blk

    flat = jnp.pad(flat, (0, t_pad - t))          # pad id 0 -> zero row, sliced off
    idx2d = flat.reshape(t_pad // pack, pack)

    blk_rows = blk // pack
    out_rows = t_pad // pack

    # Explicit VMEM budget (lane/sublane-padded tiles): double-buffered index +
    # output tiles, single-buffered resident table, materialized one-hot and
    # f32 MXU accumulator.  Cap below the v7x 64 MiB physical ceiling.
    vmem_needed = (2 * _vmem_tile_bytes(blk_rows, pack, 4)
                   + 2 * _vmem_tile_bytes(blk_rows, pd, itemsize)
                   + _vmem_tile_bytes(pv, pd, itemsize)
                   + _vmem_tile_bytes(blk_rows, pv, 4)
                   + _vmem_tile_bytes(blk_rows, pd, 4))
    vmem_cap = 48 << 20
    if not force_pallas and vmem_needed + (8 << 20) > vmem_cap:
        return _xla_gather()
    vmem_limit = int(min(max(vmem_needed + (8 << 20), 32 << 20), vmem_cap))

    def _call(table_spec):
        return pl.pallas_call(
            _time_embedding_kernel,
            out_shape=jax.ShapeDtypeStruct((out_rows, pd), table.dtype),
            grid_spec=pltpu.PrefetchScalarGridSpec(
                num_scalar_prefetch=0,
                grid=(n_blocks,),
                in_specs=[
                    pl.BlockSpec((blk_rows, pack), lambda i: (i, 0)),  # index tile
                    table_spec,                                        # resident table
                ],
                out_specs=pl.BlockSpec((blk_rows, pd), lambda i: (i, 0)),
            ),
            compiler_params=pltpu.CompilerParams(
                dimension_semantics=("parallel",),
                vmem_limit_bytes=vmem_limit,
            ),
        )(idx2d, packed)

    try:
        # Constant index_map -> a single VMEM buffer suffices for the table
        # (halves its footprint; matters on v7x's 64 MiB VMEM).
        out = _call(pl.BlockSpec((pv, pd), lambda i: (0, 0),
                                 pipeline_mode=pl.Buffered(1)))
    except Exception:
        # Fallback if single-buffering via pipeline_mode is unsupported on this
        # jax version; the table is small, default double-buffering is fine.
        out = _call(pl.BlockSpec((pv, pd), lambda i: (0, 0)))

    # (rows, pack*D) -> (t_pad, D) only splits the lane dim: layout-trivial.
    return out.reshape(t_pad, d)[:t].reshape(*orig_shape, d)


if __name__ == "__main__":
    time_slot = 24            # vocabulary = time_slot + 1 = 25 rows (row 0 = padding)
    embedding_dim = 32
    vocab = time_slot + 1

    key = jax.random.PRNGKey(0)
    k_table, k_small, k_big = jax.random.split(key, 3)

    # nn.Embedding default init: N(0, 1); padding_idx row kept at zero.
    table = jax.random.normal(k_table, (vocab, embedding_dim), jnp.float32)
    table = table.at[0].set(0.0)

    def ref_embed(idx):
        valid = (idx >= 0) & (idx < vocab)
        return jnp.where(valid[..., None], table[jnp.clip(idx, 0, vocab - 1)], 0.0)

    # Small case (batch=2, seq=8): force the Pallas path so the kernel itself
    # is exercised (the wrapper would otherwise use the XLA-gather fallback).
    tf_small = jax.random.randint(k_small, (2, 8), 0, vocab, dtype=jnp.int32)
    out_small = jax.block_until_ready(time_embeddings(tf_small, table, force_pallas=True))
    assert out_small.shape == (2, 8, embedding_dim)
    assert jnp.allclose(out_small, ref_embed(tf_small), atol=1e-6), "small-case mismatch"

    # Fallback path must agree with the kernel on the same input.
    out_small_xla = jax.block_until_ready(time_embeddings(tf_small, table))
    assert jnp.allclose(out_small_xla, out_small, atol=1e-6), "fallback mismatch"

    # Larger case (batch=4, seq=1024 -> 4096 tokens): natural Pallas path with
    # 2 parallel grid steps of 2048 tokens and lane-dense packed stores.
    # One id is pushed out of range to check the zero-row OOB semantics.
    tf_big = jax.random.randint(k_big, (4, 1024), 0, vocab, dtype=jnp.int32)
    tf_big = tf_big.at[0, 0].set(vocab + 7)
    out_big = jax.block_until_ready(time_embeddings(tf_big, table))
    assert out_big.shape == (4, 1024, embedding_dim)
    assert jnp.allclose(out_big, ref_embed(tf_big), atol=1e-6), "large-case mismatch"
    assert jnp.allclose(out_big[0, 0], 0.0), "OOB index should give a zero row"

    print("KERNEL_OK")
</pallas_src>

<mosaic_0001>
module attributes {stable_mosaic.version = 11 : i64} {
  func.func @_time_embedding_kernel(%arg0: i32, %arg1: memref<8x4xi32, #tpu.memory_space<vmem>>, %arg2: memref<100x128xf32, #tpu.memory_space<vmem>>, %arg3: memref<8x128xf32, #tpu.memory_space<vmem>>) attributes {dimension_semantics = [#tpu.dimension_semantics<parallel>], iteration_bounds = array<i64: 1>, scalar_prefetch = 0 : i64, scratch_operands = 0 : i64, tpu.core_type = #tpu.core_type<tc>, window_params = [{transform_indices = @transform_0, window_bounds = array<i64: 8, 4>}, {pipeline_mode = #tpu.pipeline_mode<synchronous>, transform_indices = @transform_1, window_bounds = array<i64: 100, 128>}, {transform_indices = @transform_2, window_bounds = array<i64: 8, 128>}]} {
    %c0 = arith.constant 0 : index
    %c0_0 = arith.constant 0 : index
    %0 = vector.load %arg1[%c0, %c0_0] : memref<8x4xi32, #tpu.memory_space<vmem>>, vector<8x4xi32>
    %1 = tpu.iota {dimensions = array<i32: 1>} : vector<8x100xi32>
    %cst = arith.constant 0.000000e+00 : f32
    %2 = vector.broadcast %cst : f32 to vector<8x100xf32>
    %3 = vector.extract_strided_slice %0 {offsets = [0, 0], sizes = [8, 1], strides = [1, 1]} : vector<8x4xi32> to vector<8x1xi32>
    %c0_i32 = arith.constant 0 : i32
    %4 = vector.broadcast %c0_i32 : i32 to vector<8x1xi32>
    %5 = arith.cmpi sge, %3, %4 : vector<8x1xi32>
    %c25_i32 = arith.constant 25 : i32
    %6 = vector.broadcast %c25_i32 : i32 to vector<8x1xi32>
    %7 = arith.cmpi slt, %3, %6 : vector<8x1xi32>
    %8 = arith.andi %5, %7 : vector<8x1xi1>
    %c0_i32_1 = arith.constant 0 : i32
    %9 = vector.broadcast %c0_i32_1 : i32 to vector<8x1xi32>
    %10 = arith.addi %3, %9 : vector<8x1xi32>
    %c-1_i32 = arith.constant -1 : i32
    %11 = vector.broadcast %c-1_i32 : i32 to vector<8x1xi32>
    %12 = arith.select %8, %10, %11 : vector<8x1xi1>, vector<8x1xi32>
    %13 = vector.broadcast %12 : vector<8x1xi32> to vector<8x100xi32>
    %14 = arith.cmpi eq, %1, %13 : vector<8x100xi32>
    %15 = arith.extui %14 : vector<8x100xi1> to vector<8x100xi32>
    %16 = arith.sitofp %15 : vector<8x100xi32> to vector<8x100xf32>
    %17 = arith.addf %2, %16 : vector<8x100xf32>
    %18 = vector.extract_strided_slice %0 {offsets = [0, 1], sizes = [8, 1], strides = [1, 1]} : vector<8x4xi32> to vector<8x1xi32>
    %c0_i32_2 = arith.constant 0 : i32
    %19 = vector.broadcast %c0_i32_2 : i32 to vector<8x1xi32>
    %20 = arith.cmpi sge, %18, %19 : vector<8x1xi32>
    %c25_i32_3 = arith.constant 25 : i32
    %21 = vector.broadcast %c25_i32_3 : i32 to vector<8x1xi32>
    %22 = arith.cmpi slt, %18, %21 : vector<8x1xi32>
    %23 = arith.andi %20, %22 : vector<8x1xi1>
    %c25_i32_4 = arith.constant 25 : i32
    %24 = vector.broadcast %c25_i32_4 : i32 to vector<8x1xi32>
    %25 = arith.addi %18, %24 : vector<8x1xi32>
    %c-1_i32_5 = arith.constant -1 : i32
    %26 = vector.broadcast %c-1_i32_5 : i32 to vector<8x1xi32>
    %27 = arith.select %23, %25, %26 : vector<8x1xi1>, vector<8x1xi32>
    %28 = vector.broadcast %27 : vector<8x1xi32> to vector<8x100xi32>
    %29 = arith.cmpi eq, %1, %28 : vector<8x100xi32>
    %30 = arith.extui %29 : vector<8x100xi1> to vector<8x100xi32>
    %31 = arith.sitofp %30 : vector<8x100xi32> to vector<8x100xf32>
    %32 = arith.addf %17, %31 : vector<8x100xf32>
    %33 = vector.extract_strided_slice %0 {offsets = [0, 2], sizes = [8, 1], strides = [1, 1]} : vector<8x4xi32> to vector<8x1xi32>
    %c0_i32_6 = arith.constant 0 : i32
    %34 = vector.broadcast %c0_i32_6 : i32 to vector<8x1xi32>
    %35 = arith.cmpi sge, %33, %34 : vector<8x1xi32>
    %c25_i32_7 = arith.constant 25 : i32
    %36 = vector.broadcast %c25_i32_7 : i32 to vector<8x1xi32>
    %37 = arith.cmpi slt, %33, %36 : vector<8x1xi32>
    %38 = arith.andi %35, %37 : vector<8x1xi1>
    %c50_i32 = arith.constant 50 : i32
    %39 = vector.broadcast %c50_i32 : i32 to vector<8x1xi32>
    %40 = arith.addi %33, %39 : vector<8x1xi32>
    %c-1_i32_8 = arith.constant -1 : i32
    %41 = vector.broadcast %c-1_i32_8 : i32 to vector<8x1xi32>
    %42 = arith.select %38, %40, %41 : vector<8x1xi1>, vector<8x1xi32>
    %43 = vector.broadcast %42 : vector<8x1xi32> to vector<8x100xi32>
    %44 = arith.cmpi eq, %1, %43 : vector<8x100xi32>
    %45 = arith.extui %44 : vector<8x100xi1> to vector<8x100xi32>
    %46 = arith.sitofp %45 : vector<8x100xi32> to vector<8x100xf32>
    %47 = arith.addf %32, %46 : vector<8x100xf32>
    %48 = vector.extract_strided_slice %0 {offsets = [0, 3], sizes = [8, 1], strides = [1, 1]} : vector<8x4xi32> to vector<8x1xi32>
    %c0_i32_9 = arith.constant 0 : i32
    %49 = vector.broadcast %c0_i32_9 : i32 to vector<8x1xi32>
    %50 = arith.cmpi sge, %48, %49 : vector<8x1xi32>
    %c25_i32_10 = arith.constant 25 : i32
    %51 = vector.broadcast %c25_i32_10 : i32 to vector<8x1xi32>
    %52 = arith.cmpi slt, %48, %51 : vector<8x1xi32>
    %53 = arith.andi %50, %52 : vector<8x1xi1>
    %c75_i32 = arith.constant 75 : i32
    %54 = vector.broadcast %c75_i32 : i32 to vector<8x1xi32>
    %55 = arith.addi %48, %54 : vector<8x1xi32>
    %c-1_i32_11 = arith.constant -1 : i32
    %56 = vector.broadcast %c-1_i32_11 : i32 to vector<8x1xi32>
    %57 = arith.select %53, %55, %56 : vector<8x1xi1>, vector<8x1xi32>
    %58 = vector.broadcast %57 : vector<8x1xi32> to vector<8x100xi32>
    %59 = arith.cmpi eq, %1, %58 : vector<8x100xi32>
    %60 = arith.extui %59 : vector<8x100xi1> to vector<8x100xi32>
    %61 = arith.sitofp %60 : vector<8x100xi32> to vector<8x100xf32>
    %62 = arith.addf %47, %61 : vector<8x100xf32>
    %c0_12 = arith.constant 0 : index
    %c0_13 = arith.constant 0 : index
    %63 = vector.load %arg2[%c0_12, %c0_13] : memref<100x128xf32, #tpu.memory_space<vmem>>, vector<100x128xf32>
    %cst_14 = arith.constant dense<0.000000e+00> : vector<8x128xf32>
    %64 = tpu.matmul %62, %63, %cst_14 {dimension_numbers = #tpu.dot_dimension_numbers<[1], [0], [0], [1], [0, 0, 1, 1], [], []>} : vector<8x100xf32>, vector<100x128xf32>, vector<8x128xf32> -> vector<8x128xf32>
    %c0_15 = arith.constant 0 : index
    %c0_16 = arith.constant 0 : index
    %65 = vector.load %arg3[%c0_15, %c0_16] : memref<8x128xf32, #tpu.memory_space<vmem>>, vector<8x128xf32>
    tpu.vector_store %arg3[%c0_15, %c0_16], %64 {strides = array<i32>} : memref<8x128xf32, #tpu.memory_space<vmem>>, vector<8x128xf32>,
    return
  }
  func.func @transform_0(%arg0: i32) -> (i32, i32) {
    %c0_i32 = arith.constant 0 : i32
    %c0_i32_0 = arith.constant 0 : i32
    return %arg0, %c0_i32 : i32, i32
  }
  func.func @transform_1(%arg0: i32) -> (i32, i32) {
    %c0_i32 = arith.constant 0 : i32
    %c0_i32_0 = arith.constant 0 : i32
    %c0_i32_1 = arith.constant 0 : i32
    return %c0_i32, %c0_i32_0 : i32, i32
  }
  func.func @transform_2(%arg0: i32) -> (i32, i32) {
    %c0_i32 = arith.constant 0 : i32
    %c0_i32_0 = arith.constant 0 : i32
    return %arg0, %c0_i32 : i32, i32
  }
}

module attributes {stable_mosaic.version = 11 : i64} {
  func.func @_time_embedding_kernel(%arg0: i32, %arg1: memref<8x4xi32, #tpu.memory_space<vmem>>, %arg2: memref<100x128xf32, #tpu.memory_space<vmem>>, %arg3: memref<8x128xf32, #tpu.memory_space<vmem>>) attributes {dimension_semantics = [#tpu.dimension_semantics<parallel>], iteration_bounds = array<i64: 1>, scalar_prefetch = 0 : i64, scratch_operands = 0 : i64, tpu.core_type = #tpu.core_type<tc>, window_params = [{transform_indices = @transform_0, window_bounds = array<i64: 8, 4>}, {pipeline_mode = #tpu.pipeline_mode<synchronous>, transform_indices = @transform_1, window_bounds = array<i64: 100, 128>}, {transform_indices = @transform_2, window_bounds = array<i64: 8, 128>}]} {
    %c0 = arith.constant 0 : index
    %c0_0 = arith.constant 0 : index
    %0 = vector.load %arg1[%c0, %c0_0] : memref<8x4xi32, #tpu.memory_space<vmem>>, vector<8x4xi32>
    %1 = tpu.iota {dimensions = array<i32: 1>} : vector<8x100xi32>
    %cst = arith.constant 0.000000e+00 : f32
    %2 = vector.broadcast %cst : f32 to vector<8x100xf32>
    %3 = vector.extract_strided_slice %0 {offsets = [0, 0], sizes = [8, 1], strides = [1, 1]} : vector<8x4xi32> to vector<8x1xi32>
    %c0_i32 = arith.constant 0 : i32
    %4 = vector.broadcast %c0_i32 : i32 to vector<8x1xi32>
    %5 = arith.cmpi sge, %3, %4 : vector<8x1xi32>
    %c25_i32 = arith.constant 25 : i32
    %6 = vector.broadcast %c25_i32 : i32 to vector<8x1xi32>
    %7 = arith.cmpi slt, %3, %6 : vector<8x1xi32>
    %8 = arith.andi %5, %7 : vector<8x1xi1>
    %c0_i32_1 = arith.constant 0 : i32
    %9 = vector.broadcast %c0_i32_1 : i32 to vector<8x1xi32>
    %10 = arith.addi %3, %9 : vector<8x1xi32>
    %c-1_i32 = arith.constant -1 : i32
    %11 = vector.broadcast %c-1_i32 : i32 to vector<8x1xi32>
    %12 = arith.select %8, %10, %11 : vector<8x1xi1>, vector<8x1xi32>
    %13 = vector.broadcast %12 : vector<8x1xi32> to vector<8x100xi32>
    %14 = arith.cmpi eq, %1, %13 : vector<8x100xi32>
    %15 = arith.extui %14 : vector<8x100xi1> to vector<8x100xi32>
    %16 = arith.sitofp %15 : vector<8x100xi32> to vector<8x100xf32>
    %17 = arith.addf %2, %16 : vector<8x100xf32>
    %18 = vector.extract_strided_slice %0 {offsets = [0, 1], sizes = [8, 1], strides = [1, 1]} : vector<8x4xi32> to vector<8x1xi32>
    %c0_i32_2 = arith.constant 0 : i32
    %19 = vector.broadcast %c0_i32_2 : i32 to vector<8x1xi32>
    %20 = arith.cmpi sge, %18, %19 : vector<8x1xi32>
    %c25_i32_3 = arith.constant 25 : i32
    %21 = vector.broadcast %c25_i32_3 : i32 to vector<8x1xi32>
    %22 = arith.cmpi slt, %18, %21 : vector<8x1xi32>
    %23 = arith.andi %20, %22 : vector<8x1xi1>
    %c25_i32_4 = arith.constant 25 : i32
    %24 = vector.broadcast %c25_i32_4 : i32 to vector<8x1xi32>
    %25 = arith.addi %18, %24 : vector<8x1xi32>
    %c-1_i32_5 = arith.constant -1 : i32
    %26 = vector.broadcast %c-1_i32_5 : i32 to vector<8x1xi32>
    %27 = arith.select %23, %25, %26 : vector<8x1xi1>, vector<8x1xi32>
    %28 = vector.broadcast %27 : vector<8x1xi32> to vector<8x100xi32>
    %29 = arith.cmpi eq, %1, %28 : vector<8x100xi32>
    %30 = arith.extui %29 : vector<8x100xi1> to vector<8x100xi32>
    %31 = arith.sitofp %30 : vector<8x100xi32> to vector<8x100xf32>
    %32 = arith.addf %17, %31 : vector<8x100xf32>
    %33 = vector.extract_strided_slice %0 {offsets = [0, 2], sizes = [8, 1], strides = [1, 1]} : vector<8x4xi32> to vector<8x1xi32>
    %c0_i32_6 = arith.constant 0 : i32
    %34 = vector.broadcast %c0_i32_6 : i32 to vector<8x1xi32>
    %35 = arith.cmpi sge, %33, %34 : vector<8x1xi32>
    %c25_i32_7 = arith.constant 25 : i32
    %36 = vector.broadcast %c25_i32_7 : i32 to vector<8x1xi32>
    %37 = arith.cmpi slt, %33, %36 : vector<8x1xi32>
    %38 = arith.andi %35, %37 : vector<8x1xi1>
    %c50_i32 = arith.constant 50 : i32
    %39 = vector.broadcast %c50_i32 : i32 to vector<8x1xi32>
    %40 = arith.addi %33, %39 : vector<8x1xi32>
    %c-1_i32_8 = arith.constant -1 : i32
    %41 = vector.broadcast %c-1_i32_8 : i32 to vector<8x1xi32>
    %42 = arith.select %38, %40, %41 : vector<8x1xi1>, vector<8x1xi32>
    %43 = vector.broadcast %42 : vector<8x1xi32> to vector<8x100xi32>
    %44 = arith.cmpi eq, %1, %43 : vector<8x100xi32>
    %45 = arith.extui %44 : vector<8x100xi1> to vector<8x100xi32>
    %46 = arith.sitofp %45 : vector<8x100xi32> to vector<8x100xf32>
    %47 = arith.addf %32, %46 : vector<8x100xf32>
    %48 = vector.extract_strided_slice %0 {offsets = [0, 3], sizes = [8, 1], strides = [1, 1]} : vector<8x4xi32> to vector<8x1xi32>
    %c0_i32_9 = arith.constant 0 : i32
    %49 = vector.broadcast %c0_i32_9 : i32 to vector<8x1xi32>
    %50 = arith.cmpi sge, %48, %49 : vector<8x1xi32>
    %c25_i32_10 = arith.constant 25 : i32
    %51 = vector.broadcast %c25_i32_10 : i32 to vector<8x1xi32>
    %52 = arith.cmpi slt, %48, %51 : vector<8x1xi32>
    %53 = arith.andi %50, %52 : vector<8x1xi1>
    %c75_i32 = arith.constant 75 : i32
    %54 = vector.broadcast %c75_i32 : i32 to vector<8x1xi32>
    %55 = arith.addi %48, %54 : vector<8x1xi32>
    %c-1_i32_11 = arith.constant -1 : i32
    %56 = vector.broadcast %c-1_i32_11 : i32 to vector<8x1xi32>
    %57 = arith.select %53, %55, %56 : vector<8x1xi1>, vector<8x1xi32>
    %58 = vector.broadcast %57 : vector<8x1xi32> to vector<8x100xi32>
    %59 = arith.cmpi eq, %1, %58 : vector<8x100xi32>
    %60 = arith.extui %59 : vector<8x100xi1> to vector<8x100xi32>
    %61 = arith.sitofp %60 : vector<8x100xi32> to vector<8x100xf32>
    %62 = arith.addf %47, %61 : vector<8x100xf32>
    %c0_12 = arith.constant 0 : index
    %c0_13 = arith.constant 0 : index
    %63 = vector.load %arg2[%c0_12, %c0_13] : memref<100x128xf32, #tpu.memory_space<vmem>>, vector<100x128xf32>
    %cst_14 = arith.constant dense<0.000000e+00> : vector<8x128xf32>
    %64 = tpu.matmul %62, %63, %cst_14 {dimension_numbers = #tpu.dot_dimension_numbers<[1], [0], [0], [1], [0, 0, 1, 1], [], []>} : vector<8x100xf32>, vector<100x128xf32>, vector<8x128xf32> -> vector<8x128xf32>
    %c0_15 = arith.constant 0 : index
    %c0_16 = arith.constant 0 : index
    %65 = vector.load %arg3[%c0_15, %c0_16] : memref<8x128xf32, #tpu.memory_space<vmem>>, vector<8x128xf32>
    tpu.vector_store %arg3[%c0_15, %c0_16], %64 {strides = array<i32>} : memref<8x128xf32, #tpu.memory_space<vmem>>, vector<8x128xf32>,
    return
  }
  func.func @transform_0(%arg0: i32) -> (i32, i32) {
    %c0_i32 = arith.constant 0 : i32
    %c0_i32_0 = arith.constant 0 : i32
    return %arg0, %c0_i32 : i32, i32
  }
  func.func @transform_1(%arg0: i32) -> (i32, i32) {
    %c0_i32 = arith.constant 0 : i32
    %c0_i32_0 = arith.constant 0 : i32
    %c0_i32_1 = arith.constant 0 : i32
    return %c0_i32, %c0_i32_0 : i32, i32
  }
  func.func @transform_2(%arg0: i32) -> (i32, i32) {
    %c0_i32 = arith.constant 0 : i32
    %c0_i32_0 = arith.constant 0 : i32
    return %arg0, %c0_i32 : i32, i32
  }
}

</mosaic_0001>

<bundles_post_ra>
// kernel: tpu_custom_call.1
= control target key start
LH: loop header
LB: loop body
LE: loop exit
PB: predicated region body
PF: predicated region fallthrough
CT: control target
= control target key end

     0   :  { %7 = vsyncpa [#allocation3], 0  ;;  %s245_s0 = inlined_call_operand.vmem [shape: s32[8,4], index: 0, kind: input, shape index: {}]   ;;  %s246_s1 = inlined_call_operand.hbm [shape: f32[100,128], index: 1, kind: input, shape index: {}]   ;;  %s247_s2 = inlined_call_operand.hbm [shape: f32[8,128], index: 2, kind: output, shape index: {}]  }
   0x1   :  { %8 = vsyncpa [#allocation4], 0  ;;  %s15_s11 = sshll.u32 %s246_s1, 4  ;;  %s200_s12 = smov [#allocation2]   ;;  %s16_s11 = int_to_ptr.hbm [resolvable:$true] %s15_s11 }
   0x2   :  { %s17_s13 = sshll.u32 %s200_s12, 4  ;;  %s201_s14 = smov 128   ;;  %s18_s13 = int_to_ptr.vmem [resolvable:$true] %s17_s13 }
   0x3   :  { %s202_s15 = smov 8  }
   0x4   :  { %23 = dma.hbm_to_vmem [thread:$0]  %s16_s11, 1664, %s18_s13, [#allocation3], %s201_s14, %s201_s14, %s202_s15  }
   0x5   :  { %196 = dma.done.wait [#allocation3], 1664  }
   0x6   :  { %197 = vsyncadd [#allocation3], 4294965632  ;;  %v203_v0 = vmov 0   ;;  %v204_v1 = vmov 2   ;;  %vm86_vm0 = vcmask 1043456   ;;  %v28_v2 = vld [vmem:[%s245_s0] sm:$0xff]  ;;  %v29_v26 = vlaneseq }
   0x7   :  { %143 = vset.pattern.permute.xlu0 %v203_v0  ;;  %145 = vset.pattern.permute.xlu1 %v204_v1  ;;  %v81_v3 = vld [vmem:[#allocation2 + $0x60] sm:$0xf]  ;;  %v80_v4 = vld [vmem:[#allocation2 + $0x58] sm:$0xff]  ;;  %vm31_vm1 = vcmp.ge.s32.totalorder %v28_v2, 0  ;;  %vm32_vm2 = vcmp.lt.s32.totalorder %v28_v2, 25  ;;  %v51_v5 = vadd.s32 50, %v28_v2 }
   0x8   :  { %132 = vmatpush.msk.msra.mxu0 %vm86_vm0, %v81_v3  ;;  %vm230_vm3 = vmand %vm31_vm1, %vm32_vm2  ;;  %v79_v7 = vld [vmem:[#allocation2 + $0x50] sm:$0xff]  ;;  %v78_v10 = vld [vmem:[#allocation2 + $0x48] sm:$0xff]  ;;  %v42_v11 = vadd.s32 25, %v28_v2  ;;  %v60_v12 = vadd.s32 75, %v28_v2  ;;  %v205_v15 = vmov 1   ;;  %v206_v16 = vmov 3  }
   0x9   :  { %v34_v8 = vsel %vm230_vm3, %v28_v2, 4294967295  ;;  %v52_v9 = vsel %vm230_vm3, %v51_v5, 4294967295  ;;  %v77_v17 = vld [vmem:[#allocation2 + $0x40] sm:$0xff]  ;;  %v76_v18 = vld [vmem:[#allocation2 + $0x38] sm:$0xff]  ;;  %v75_v19 = vld [vmem:[#allocation2 + $0x30] sm:$0xff]  ;;  %v30_v29 = vand.u32 127, %v29_v26 }
   0xa   :  { %94 = vmatpush.msra.mxu0 %v80_v4  ;;  %36 = vperm.xlu0 %143, %v34_v8   ;;  %v43_v13 = vsel %vm230_vm3, %v42_v11, 4294967295  ;;  %v61_v14 = vsel %vm230_vm3, %v60_v12, 4294967295  ;;  %v74_v20 = vld [vmem:[#allocation2 + $0x28] sm:$0xff]  ;;  %v73_v21 = vld [vmem:[#allocation2 + $0x20] sm:$0xff]  ;;  %v72_v22 = vld [vmem:[#allocation2 + $0x18] sm:$0xff]  ;;  %v207_v32 = vmov 0.0  }
   0xb   :  { %54 = vperm.xlu1 %145, %v52_v9   ;;  %v71_v23 = vld [vmem:[#allocation2 + $0x10] sm:$0xff]  ;;  %v70_v24 = vld [vmem:[#allocation2 + $0x8] sm:$0xff]  ;;  %v69_v25 = vld [vmem:[#allocation2] sm:$0xff]  ;;  %vm82_vm8 = vcmask 818176   ;;  %s208_s0 = smov [#allocation5]   ;;  %s118_s20 = sshll.u32 %s247_s2, 4  ;;  %s119_s20 = int_to_ptr.hbm [resolvable:$true] %s118_s20 }
   0xc   :  { %95 = vmatpush.msra.mxu0 %v79_v7  ;;  %s116_s1 = sshll.u32 %s208_s0, 4  ;;  %s117_s1 = int_to_ptr.vmem [resolvable:$true] %s116_s1 }
   0xe   :  { %96 = vmatpush.msra.mxu0 %v78_v10 }
  0x10   :  { %97 = vmatpush.msra.mxu0 %v77_v17 }
  0x12   :  { %144 = vset.pattern.permute.xlu0 %v205_v15  ;;  %98 = vmatpush.msra.mxu0 %v76_v18 }
  0x13   :  { %146 = vset.pattern.permute.xlu1 %v206_v16  ;;  %45 = vperm.xlu0 %144, %v43_v13  }
  0x14   :  { %63 = vperm.xlu1 %146, %v61_v14   ;;  %99 = vmatpush.msra.mxu0 %v75_v19 }
  0x16   :  { %100 = vmatpush.msra.mxu0 %v74_v20 }
  0x18   :  { %101 = vmatpush.msra.mxu0 %v73_v21 }
  0x1a   :  { %102 = vmatpush.msra.mxu0 %v72_v22 }
  0x1b   :  { %147 = vset.pattern.permute.xlu0 %v206_v16 }
  0x1c   :  { %103 = vmatpush.msra.mxu0 %v71_v23 }
  0x1e   :  { %104 = vmatpush.msra.mxu0 %v70_v24 }
  0x20   :  { %105 = vmatpush.msra.mxu0 %v69_v25 }
  0x7c   :  { %v37_v27 = vpop.permute.xlu0 %36 }
  0x7d   :  { %v55_v28 = vpop.permute.xlu1 %54  ;;  %vm38_vm4 = vcmp.eq.s32.totalorder %v30_v29, %v37_v27 }
  0x7e   :  { %vm56_vm5 = vcmp.eq.s32.totalorder %v30_v29, %v55_v28  ;;  %v128_v33 = vsel %vm38_vm4, 1.0, %v207_v32 }
  0x7f   :  { %v130_v36 = vsel %vm56_vm5, 1.0, %v207_v32 }
  0x85   :  { %v46_v30 = vpop.permute.xlu0 %45 }
  0x86   :  { %v64_v31 = vpop.permute.xlu1 %63  ;;  %vm47_vm6 = vcmp.eq.s32.totalorder %v30_v29, %v46_v30 }
  0x87   :  { %vm65_vm7 = vcmp.eq.s32.totalorder %v30_v29, %v64_v31  ;;  %v129_v34 = vsel %vm47_vm6, 1.0, %v207_v32 }
  0x88   :  { %v50_v35 = vadd.f32 %v129_v34, %v128_v33  ;;  %v131_v37 = vsel %vm65_vm7, 1.0, %v207_v32 }
  0x8a   :  { %v59_v38 = vadd.f32 %v130_v36, %v50_v35 }
  0x8c   :  { %v68_v39 = vadd.f32 %v131_v37, %v59_v38 }
  0x8e   :  { %133 = vmatmul.msk.f32.vlgmr.msra.gmra.mxu0 %vm82_vm8, %v68_v39 }
 0x10b   :  { %v107_v40 = vpop.f32.mrf.mxu0 }
 0x10c   :  { %110 = vst [vmem:[#allocation5] sm:$0xff] %v107_v40 }
 0x10d   :  { %121 = dma.vmem_to_hbm [thread:$0]  %s117_s1, 128, %s119_s20, [#allocation4]  }
 0x10e   :  { %198 = dma.done.wait [#allocation4], 128  }
 0x10f   :  { %199 = vsyncadd [#allocation4], 4294967168 }
 0x110   :  { %126 = vsyncpa [#allocation3], 1 }
 0x111   :  { %127 = vsyncpa [#allocation4], 1 }

// kernel: tpu_custom_call.1
= control target key start
LH: loop header
LB: loop body
LE: loop exit
PB: predicated region body
PF: predicated region fallthrough
CT: control target
= control target key end

     0   :  { %7 = vsyncpa [#allocation3], 0  ;;  %s245_s0 = inlined_call_operand.vmem [shape: s32[8,4], index: 0, kind: input, shape index: {}]   ;;  %s246_s1 = inlined_call_operand.hbm [shape: f32[100,128], index: 1, kind: input, shape index: {}]   ;;  %s247_s2 = inlined_call_operand.hbm [shape: f32[8,128], index: 2, kind: output, shape index: {}]  }
   0x1   :  { %8 = vsyncpa [#allocation4], 0  ;;  %s15_s11 = sshll.u32 %s246_s1, 4  ;;  %s200_s12 = smov [#allocation2]   ;;  %s16_s11 = int_to_ptr.hbm [resolvable:$true] %s15_s11 }
   0x2   :  { %s17_s13 = sshll.u32 %s200_s12, 4  ;;  %s201_s14 = smov 128   ;;  %s18_s13 = int_to_ptr.vmem [resolvable:$true] %s17_s13 }
   0x3   :  { %s202_s15 = smov 8  }
   0x4   :  { %23 = dma.hbm_to_vmem [thread:$0]  %s16_s11, 1664, %s18_s13, [#allocation3], %s201_s14, %s201_s14, %s202_s15  }
   0x5   :  { %196 = dma.done.wait [#allocation3], 1664  }
   0x6   :  { %197 = vsyncadd [#allocation3], 4294965632  ;;  %v203_v0 = vmov 0   ;;  %v204_v1 = vmov 2   ;;  %vm86_vm0 = vcmask 1043456   ;;  %v28_v2 = vld [vmem:[%s245_s0] sm:$0xff]  ;;  %v29_v26 = vlaneseq }
   0x7   :  { %143 = vset.pattern.permute.xlu0 %v203_v0  ;;  %145 = vset.pattern.permute.xlu1 %v204_v1  ;;  %v81_v3 = vld [vmem:[#allocation2 + $0x60] sm:$0xf]  ;;  %v80_v4 = vld [vmem:[#allocation2 + $0x58] sm:$0xff]  ;;  %vm31_vm1 = vcmp.ge.s32.totalorder %v28_v2, 0  ;;  %vm32_vm2 = vcmp.lt.s32.totalorder %v28_v2, 25  ;;  %v51_v5 = vadd.s32 50, %v28_v2 }
   0x8   :  { %132 = vmatpush.msk.msra.mxu0 %vm86_vm0, %v81_v3  ;;  %vm230_vm3 = vmand %vm31_vm1, %vm32_vm2  ;;  %v79_v7 = vld [vmem:[#allocation2 + $0x50] sm:$0xff]  ;;  %v78_v10 = vld [vmem:[#allocation2 + $0x48] sm:$0xff]  ;;  %v42_v11 = vadd.s32 25, %v28_v2  ;;  %v60_v12 = vadd.s32 75, %v28_v2  ;;  %v205_v15 = vmov 1   ;;  %v206_v16 = vmov 3  }
   0x9   :  { %v34_v8 = vsel %vm230_vm3, %v28_v2, 4294967295  ;;  %v52_v9 = vsel %vm230_vm3, %v51_v5, 4294967295  ;;  %v77_v17 = vld [vmem:[#allocation2 + $0x40] sm:$0xff]  ;;  %v76_v18 = vld [vmem:[#allocation2 + $0x38] sm:$0xff]  ;;  %v75_v19 = vld [vmem:[#allocation2 + $0x30] sm:$0xff]  ;;  %v30_v29 = vand.u32 127, %v29_v26 }
   0xa   :  { %94 = vmatpush.msra.mxu0 %v80_v4  ;;  %36 = vperm.xlu0 %143, %v34_v8   ;;  %v43_v13 = vsel %vm230_vm3, %v42_v11, 4294967295  ;;  %v61_v14 = vsel %vm230_vm3, %v60_v12, 4294967295  ;;  %v74_v20 = vld [vmem:[#allocation2 + $0x28] sm:$0xff]  ;;  %v73_v21 = vld [vmem:[#allocation2 + $0x20] sm:$0xff]  ;;  %v72_v22 = vld [vmem:[#allocation2 + $0x18] sm:$0xff]  ;;  %v207_v32 = vmov 0.0  }
   0xb   :  { %54 = vperm.xlu1 %145, %v52_v9   ;;  %v71_v23 = vld [vmem:[#allocation2 + $0x10] sm:$0xff]  ;;  %v70_v24 = vld [vmem:[#allocation2 + $0x8] sm:$0xff]  ;;  %v69_v25 = vld [vmem:[#allocation2] sm:$0xff]  ;;  %vm82_vm8 = vcmask 818176   ;;  %s208_s0 = smov [#allocation5]   ;;  %s118_s20 = sshll.u32 %s247_s2, 4  ;;  %s119_s20 = int_to_ptr.hbm [resolvable:$true] %s118_s20 }
   0xc   :  { %95 = vmatpush.msra.mxu0 %v79_v7  ;;  %s116_s1 = sshll.u32 %s208_s0, 4  ;;  %s117_s1 = int_to_ptr.vmem [resolvable:$true] %s116_s1 }
   0xe   :  { %96 = vmatpush.msra.mxu0 %v78_v10 }
  0x10   :  { %97 = vmatpush.msra.mxu0 %v77_v17 }
  0x12   :  { %144 = vset.pattern.permute.xlu0 %v205_v15  ;;  %98 = vmatpush.msra.mxu0 %v76_v18 }
  0x13   :  { %146 = vset.pattern.permute.xlu1 %v206_v16  ;;  %45 = vperm.xlu0 %144, %v43_v13  }
  0x14   :  { %63 = vperm.xlu1 %146, %v61_v14   ;;  %99 = vmatpush.msra.mxu0 %v75_v19 }
  0x16   :  { %100 = vmatpush.msra.mxu0 %v74_v20 }
  0x18   :  { %101 = vmatpush.msra.mxu0 %v73_v21 }
  0x1a   :  { %102 = vmatpush.msra.mxu0 %v72_v22 }
  0x1b   :  { %147 = vset.pattern.permute.xlu0 %v206_v16 }
  0x1c   :  { %103 = vmatpush.msra.mxu0 %v71_v23 }
  0x1e   :  { %104 = vmatpush.msra.mxu0 %v70_v24 }
  0x20   :  { %105 = vmatpush.msra.mxu0 %v69_v25 }
  0x7c   :  { %v37_v27 = vpop.permute.xlu0 %36 }
  0x7d   :  { %v55_v28 = vpop.permute.xlu1 %54  ;;  %vm38_vm4 = vcmp.eq.s32.totalorder %v30_v29, %v37_v27 }
  0x7e   :  { %vm56_vm5 = vcmp.eq.s32.totalorder %v30_v29, %v55_v28  ;;  %v128_v33 = vsel %vm38_vm4, 1.0, %v207_v32 }
  0x7f   :  { %v130_v36 = vsel %vm56_vm5, 1.0, %v207_v32 }
  0x85   :  { %v46_v30 = vpop.permute.xlu0 %45 }
  0x86   :  { %v64_v31 = vpop.permute.xlu1 %63  ;;  %vm47_vm6 = vcmp.eq.s32.totalorder %v30_v29, %v46_v30 }
  0x87   :  { %vm65_vm7 = vcmp.eq.s32.totalorder %v30_v29, %v64_v31  ;;  %v129_v34 = vsel %vm47_vm6, 1.0, %v207_v32 }
  0x88   :  { %v50_v35 = vadd.f32 %v129_v34, %v128_v33  ;;  %v131_v37 = vsel %vm65_vm7, 1.0, %v207_v32 }
  0x8a   :  { %v59_v38 = vadd.f32 %v130_v36, %v50_v35 }
  0x8c   :  { %v68_v39 = vadd.f32 %v131_v37, %v59_v38 }
  0x8e   :  { %133 = vmatmul.msk.f32.vlgmr.msra.gmra.mxu0 %vm82_vm8, %v68_v39 }
 0x10b   :  { %v107_v40 = vpop.f32.mrf.mxu0 }
 0x10c   :  { %110 = vst [vmem:[#allocation5] sm:$0xff] %v107_v40 }
 0x10d   :  { %121 = dma.vmem_to_hbm [thread:$0]  %s117_s1, 128, %s119_s20, [#allocation4]  }
 0x10e   :  { %198 = dma.done.wait [#allocation4], 128  }
 0x10f   :  { %199 = vsyncadd [#allocation4], 4294967168 }
 0x110   :  { %126 = vsyncpa [#allocation3], 1 }
 0x111   :  { %127 = vsyncpa [#allocation4], 1 }

</bundles_post_ra>
